<compile_context>
chip_gen: v5e
topology: v5e:2x2
jax: 0.10.0
libtpu: 0.0.40
codegen_flags: <defaults>
</compile_context>

<pallas_src>
import math

import jax
import jax.numpy as jnp
from jax.experimental import pallas as pl
from jax.experimental.pallas import tpu as pltpu


def _copy_kernel(x_ref, o_ref):
    # Identity copy of the row-major data (what torch .view represents).
    o_ref[...] = x_ref[...]


def _block_budget_bytes() -> int:
    """Per-block VMEM budget, generation-aware.

    v5e/v6e have 128 MiB physical VMEM -> 8 MiB blocks; v7x has only 64 MiB
    -> 4 MiB blocks.  With in+out double-buffered this is at most
    4 * budget + headroom of scoped VMEM.
    """
    try:
        vmem = pltpu.get_tpu_info().vmem_capacity_bytes
    except Exception:  # interpret mode / unknown chip
        vmem = 64 << 20
    return (8 << 20) if vmem >= (100 << 20) else (4 << 20)


def _lane_dense_2d(total: int):
    """Reinterpret a flat row-major buffer as (rows, lanes), lanes % 128 == 0."""
    if total % 128 != 0:
        return None
    for lanes in (4096, 2048, 1024, 512, 256, 128):
        if total % lanes == 0:
            return total // lanes, lanes
    return None


def _identity_copy_2d(x2d: jax.Array) -> jax.Array:
    """Tiled streaming identity copy (HBM -> VMEM -> HBM) of a 2-D buffer."""
    r, c = x2d.shape
    itemsize = jnp.dtype(x2d.dtype).itemsize
    # Sub-32-bit dtypes pack along sublanes: 8 rows f32, 16 bf16, 32 int8/fp8.
    row_align = max(8, 8 * (4 // max(1, itemsize)))
    budget = _block_budget_bytes()
    row_bytes = c * itemsize

    if r * row_bytes <= budget:
        # Whole array as one block (no per-step overhead, no masked tails).
        tr, tc = r, c
    elif row_align * row_bytes <= budget:
        # Row tiling with full (lane-dense when possible) rows.
        tr = min(r, max(row_align, (budget // row_bytes) // row_align * row_align))
        tc = c
    else:
        # Very wide rows: tile columns too (multiple of 128) so a block can
        # never exceed the VMEM budget (v7x has only 64 MiB physical VMEM).
        tr = min(r, row_align)
        tc = min(c, max(128, (budget // max(1, tr * itemsize)) // 128 * 128))

    # Large copies that fit a single block: split rows so both v7x
    # TensorCores get work (no-op cost on single-TC v5e/v6e).
    if tr == r and tc == c and r >= 2 * row_align and r * row_bytes > (2 << 20):
        half = (r + 1) // 2
        tr = min(r, -(-half // row_align) * row_align)

    grid = (pl.cdiv(r, tr), pl.cdiv(c, tc))
    block_bytes = tr * tc * itemsize
    # in + out, double-buffered, plus headroom; stays under every chip's VMEM.
    vmem_limit = min(60 << 20, max(16 << 20, 4 * block_bytes + (2 << 20)))

    return pl.pallas_call(
        _copy_kernel,
        out_shape=jax.ShapeDtypeStruct((r, c), x2d.dtype),
        grid=grid,
        in_specs=[pl.BlockSpec((tr, tc), lambda i, j: (i, j))],
        out_specs=pl.BlockSpec((tr, tc), lambda i, j: (i, j)),
        cost_estimate=pl.CostEstimate(
            flops=0, transcendentals=0, bytes_accessed=2 * r * c * itemsize
        ),
        compiler_params=pltpu.CompilerParams(
            dimension_semantics=("parallel", "parallel"),
            vmem_limit_bytes=vmem_limit,
        ),
    )(x2d)


def reshape_forward(
    x: jax.Array, shape: tuple = (1, 28, 28), anchor: bool = False
) -> jax.Array:
    """Equivalent of Reshape(shape).forward(x): x.view(B, *shape).

    Default path is metadata-only (no kernel, no HBM traffic).  Pass
    anchor=True to route the data through a lane-dense Pallas identity copy
    (useful only as an explicit fusion/layout anchor).
    """
    b = x.shape[0]
    n = math.prod(shape)

    if not anchor:
        # A view/reshape is pure metadata for row-major data: free.
        return x.reshape(b, *shape)

    total = b * n
    layout = _lane_dense_2d(total)
    if layout is not None:
        # Lane-dense slab: last dim a large multiple of 128 -> unmasked vst.
        r, c = layout
        out2d = _identity_copy_2d(x.reshape(r, c))
    else:
        # Fallback: (B, n) layout; full-array block when small, row tiles otherwise.
        out2d = _identity_copy_2d(x.reshape(b, n))

    # Metadata-only reinterpretation to (B, *shape).
    return out2d.reshape(b, *shape)


if __name__ == "__main__":
    key = jax.random.PRNGKey(0)
    B = 2

    # Case 1: module default target shape (1, 28, 28) from a flat input.
    shape1 = (1, 28, 28)
    n1 = math.prod(shape1)
    x1 = jax.random.normal(key, (B, n1), dtype=jnp.float32)
    ref1 = x1.reshape(B, *shape1)

    y1 = reshape_forward(x1, shape1)                # default: metadata-only view
    y1a = reshape_forward(x1, shape1, anchor=True)  # Pallas copy (n % 128 != 0 path)
    jax.block_until_ready((y1, y1a))
    assert y1.shape == (B, *shape1) and y1.dtype == x1.dtype
    assert y1a.shape == (B, *shape1) and y1a.dtype == x1.dtype
    assert bool(jnp.all(y1 == ref1))
    assert bool(jnp.all(y1a == ref1))

    # Case 2: lane-dense anchor path (total elements % 128 == 0).
    shape2 = (4, 16, 16)
    x2 = jax.random.normal(key, (B, *shape2), dtype=jnp.float32)
    ref2 = x2.reshape(B, *shape2)
    y2 = reshape_forward(x2.reshape(B, -1), shape2, anchor=True)
    jax.block_until_ready(y2)
    assert y2.shape == (B, *shape2) and y2.dtype == x2.dtype
    assert bool(jnp.all(y2 == ref2))

    print("KERNEL_OK")
</pallas_src>

<mosaic_0001>
module attributes {stable_mosaic.version = 11 : i64} {
  func.func @_copy_kernel(%arg0: i32, %arg1: i32, %arg2: memref<2x784xf32, #tpu.memory_space<vmem>>, %arg3: memref<2x784xf32, #tpu.memory_space<vmem>>) attributes {dimension_semantics = [#tpu.dimension_semantics<parallel>, #tpu.dimension_semantics<parallel>], iteration_bounds = array<i64: 1, 1>, scalar_prefetch = 0 : i64, scratch_operands = 0 : i64, tpu.core_type = #tpu.core_type<tc>, window_params = [{transform_indices = @transform_0, window_bounds = array<i64: 2, 784>}, {transform_indices = @transform_1, window_bounds = array<i64: 2, 784>}]} {
    %c0 = arith.constant 0 : index
    %c0_0 = arith.constant 0 : index
    %0 = vector.load %arg2[%c0, %c0_0] : memref<2x784xf32, #tpu.memory_space<vmem>>, vector<2x784xf32>
    %c0_1 = arith.constant 0 : index
    %c0_2 = arith.constant 0 : index
    %1 = vector.load %arg3[%c0_1, %c0_2] : memref<2x784xf32, #tpu.memory_space<vmem>>, vector<2x784xf32>
    tpu.vector_store %arg3[%c0_1, %c0_2], %0 {strides = array<i32>} : memref<2x784xf32, #tpu.memory_space<vmem>>, vector<2x784xf32>,
    return
  }
  func.func @transform_0(%arg0: i32, %arg1: i32) -> (i32, i32) {
    %c0_i32 = arith.constant 0 : i32
    return %arg0, %arg1 : i32, i32
  }
  func.func @transform_1(%arg0: i32, %arg1: i32) -> (i32, i32) {
    %c0_i32 = arith.constant 0 : i32
    return %arg0, %arg1 : i32, i32
  }
}

</mosaic_0001>

<bundles_post_ra>
// kernel: tpu_custom_call.1
= control target key start
LH: loop header
LB: loop body
LE: loop exit
PB: predicated region body
PF: predicated region fallthrough
CT: control target
= control target key end

     0   :  { %6 = vsyncpa [#allocation3], 0  ;;  %s121_s0 = inlined_call_operand.hbm [shape: f32[2,784], index: 0, kind: input, shape index: {}]   ;;  %s122_s1 = inlined_call_operand.hbm [shape: f32[2,784], index: 1, kind: output, shape index: {}]  }
   0x1   :  { %7 = vsyncpa [#allocation4], 0  ;;  %s13_s8 = sshll.u32 %s121_s0, 4  ;;  %s103_s9 = smov [#allocation2]   ;;  %s14_s8 = int_to_ptr.hbm [resolvable:$true] %s13_s8 }
   0x2   :  { %s15_s10 = sshll.u32 %s103_s9, 4  ;;  %s16_s10 = int_to_ptr.vmem [resolvable:$true] %s15_s10 }
   0x3   :  { %18 = dma.hbm_to_vmem [thread:$0]  %s14_s8, 224, %s16_s10, [#allocation3]  }
   0x4   :  { %99 = dma.done.wait [#allocation3], 224  }
   0x5   :  { %100 = vsyncadd [#allocation3], 4294967072  ;;  %vm26_vm0 = vcmask 1041408   ;;  %vm27_vm1 = vcmask 1043458   ;;  %vm29_vm3 = vcmask 128004   ;;  %s104_s11 = smov [#allocation5]  }
   0x6   :  { %vm28_vm2 = vmor %vm27_vm1, %vm26_vm0  ;;  %s37_s12 = sshll.u32 %s104_s11, 4  ;;  %s39_s15 = sshll.u32 %s122_s1, 4  ;;  %v23_v0 = vld [vmem:[#allocation2] sm:$0xff]  ;;  %v24_v1 = vld [vmem:[#allocation2 + $0x8] sm:$0x3f]  ;;  %s38_s12 = int_to_ptr.vmem [resolvable:$true] %s37_s12  ;;  %s40_s15 = int_to_ptr.hbm [resolvable:$true] %s39_s15 }
   0x7   :  { %vm30_vm4 = vmor %vm29_vm3, %vm28_vm2  ;;  %25 = vst [vmem:[#allocation5] sm:$0xff] %v23_v0 }
   0x8   :  { %31 = vst.msk [vmem:[#allocation5 + $0x8] sm:$0x3f] %vm30_vm4, %v24_v1 }
   0x9   :  { %42 = dma.vmem_to_hbm [thread:$0]  %s38_s12, 224, %s40_s15, [#allocation4]  }
   0xa   :  { %101 = dma.done.wait [#allocation4], 224  }
   0xb   :  { %102 = vsyncadd [#allocation4], 4294967072 }
   0xc   :  { %47 = vsyncpa [#allocation3], 1 }
   0xd   :  { %48 = vsyncpa [#allocation4], 1 }

</bundles_post_ra>
